<compile_context>
chip_gen: v6e
topology: v6e:2x2x1
jax: 0.10.0
libtpu: 0.0.40
codegen_flags: <defaults>
</compile_context>

<pallas_src>
import jax
import jax.numpy as jnp
from jax.experimental import pallas as pl
from jax.experimental.pallas import tpu as pltpu

HIDDEN = 128          # Head2 hidden width (Linear(input_dim, 128))
LANE = 128            # TPU lane width
MAX_TK = 16384        # K-reduction tile cap (multiple of 128; ~4 MiB of w1/step)
VMEM_LIMIT = 32 * 1024 * 1024   # scoped VMEM budget; safe on v5e/v6e/v7x


def _round_up(n, m):
    return ((n + m - 1) // m) * m


# ----------------------------------------------------------------------------
# Kernels
# ----------------------------------------------------------------------------
def head2_kernel_single(x_ref, w1_ref, b1_ref, w2_ref, b2_ref, o_ref):
    # Gridless fast path (whole problem fits one tile).
    # x_ref : (1, Kp)   bf16     w1_ref: (Kp, 128) bf16
    # b1_ref: (1, 128)  f32      w2_ref: (128, Dp) f32
    # b2_ref: (1, Dp)   f32      o_ref : (1, Dp)   f32
    h = jnp.maximum(
        jnp.dot(x_ref[...], w1_ref[...], preferred_element_type=jnp.float32)
        + b1_ref[...], 0.0)
    o_ref[...] = jnp.dot(h, w2_ref[...],
                         preferred_element_type=jnp.float32) + b2_ref[...]


def head2_kernel_reduce(x_ref, w1_ref, b1_ref, w2_ref, b2_ref, o_ref, acc_ref):
    # Grid axis 0 = reduction over input_dim (K).
    # x_ref : (1, tk)   bf16     w1_ref: (tk, 128) bf16
    # b1_ref: (1, 128)  f32      w2_ref: (128, Dp) f32
    # b2_ref: (1, Dp)   f32      o_ref : (1, Dp)   f32
    # acc_ref: (1, 128) f32 scratch accumulator
    k = pl.program_id(0)

    @pl.when(k == 0)
    def _():
        # Start the accumulator at b1 -> no extra '+ b1' in the epilogue.
        acc_ref[...] = b1_ref[...]

    acc_ref[...] += jnp.dot(x_ref[...], w1_ref[...],
                            preferred_element_type=jnp.float32)

    @pl.when(k == pl.num_programs(0) - 1)
    def _():
        h = jnp.maximum(acc_ref[...], 0.0)            # bias already folded in
        o_ref[...] = jnp.dot(h, w2_ref[...],
                             preferred_element_type=jnp.float32) + b2_ref[...]


# ----------------------------------------------------------------------------
# One-time parameter preparation (keep OUT of the hot path)
# ----------------------------------------------------------------------------
def prepare_head2_params(w1, b1, w2, b2, max_tk=MAX_TK):
    """w1: (input_dim, 128), b1: (128,), w2: (128, output_dim), b2: (output_dim,).

    Returns padded bf16 w1 / f32 w2+biases plus static shape metadata.
    """
    d_in, hidden = w1.shape
    assert hidden == HIDDEN
    d_out = w2.shape[1]

    # K tile: one tile if small, else max_tk-wide tiles (pad input_dim to match).
    if d_in <= max_tk:
        tk = _round_up(d_in, LANE)
    else:
        tk = max_tk
    d_in_pad = _round_up(d_in, tk)
    d_out_pad = _round_up(d_out, LANE)   # lane-dense output, no masked stores

    # TODO(synk): on v6e/v7x, quantize w1 to int8/fp8 with per-channel scales
    # to halve the dominant HBM stream (validate accuracy first).
    w1_p = jnp.zeros((d_in_pad, HIDDEN), jnp.bfloat16)
    w1_p = w1_p.at[:d_in, :].set(w1.astype(jnp.bfloat16))
    # Second matmul is tiny -> keep w2 in f32 for accuracy (negligible bytes).
    w2_p = jnp.zeros((HIDDEN, d_out_pad), jnp.float32)
    w2_p = w2_p.at[:, :d_out].set(w2.astype(jnp.float32))
    b1_p = b1.reshape(1, HIDDEN).astype(jnp.float32)
    b2_p = jnp.zeros((1, d_out_pad), jnp.float32)
    b2_p = b2_p.at[0, :d_out].set(b2.astype(jnp.float32))

    return dict(w1=w1_p, b1=b1_p, w2=w2_p, b2=b2_p,
                d_in=d_in, d_out=d_out, d_in_pad=d_in_pad,
                d_out_pad=d_out_pad, tk=tk)


# ----------------------------------------------------------------------------
# Forward
# ----------------------------------------------------------------------------
def head2_forward(x, params):
    """x: arbitrary-shaped array with total size == input_dim.
    Returns (1, output_dim) float32, matching Head2.forward(x.view(1, -1))."""
    d_in, d_out = params["d_in"], params["d_out"]
    d_in_pad, d_out_pad, tk = params["d_in_pad"], params["d_out_pad"], params["tk"]
    w1, b1, w2, b2 = params["w1"], params["b1"], params["w2"], params["b2"]

    # Single pad + cast per call; no 8-row zero tile.
    x_row = x.reshape(1, -1).astype(jnp.bfloat16)
    assert x_row.shape[1] == d_in
    if d_in_pad > d_in:
        x_row = jnp.pad(x_row, ((0, 0), (0, d_in_pad - d_in)))

    nk = d_in_pad // tk

    cost = pl.CostEstimate(
        flops=2 * d_in_pad * HIDDEN + 2 * HIDDEN * d_out_pad,
        transcendentals=0,
        bytes_accessed=(d_in_pad * 2                 # x  (bf16)
                        + d_in_pad * HIDDEN * 2      # w1 (bf16)
                        + HIDDEN * 4                 # b1
                        + HIDDEN * d_out_pad * 4     # w2 (f32)
                        + d_out_pad * 4              # b2
                        + d_out_pad * 4),            # out
    )

    if nk == 1:
        # Fast path: everything fits one tile; no grid, no accumulator.
        out = pl.pallas_call(
            head2_kernel_single,
            out_shape=jax.ShapeDtypeStruct((1, d_out_pad), jnp.float32),
            compiler_params=pltpu.CompilerParams(vmem_limit_bytes=VMEM_LIMIT),
            cost_estimate=cost,
        )(x_row, w1, b1, w2, b2)
    else:
        # K-reduction grid; output tile is resident across k (accumulator).
        # TODO(synk): on v7x, split the K reduction across both TensorCores
        # (core_map + per-core partials) to use both HBM paths.
        # TODO(synk): if a profile shows the first w1 DMA exposed with few
        # large steps, add pipeline_mode=pl.Buffered(3) to the w1 BlockSpec.
        out = pl.pallas_call(
            head2_kernel_reduce,
            out_shape=jax.ShapeDtypeStruct((1, d_out_pad), jnp.float32),
            grid_spec=pltpu.PrefetchScalarGridSpec(
                num_scalar_prefetch=0,
                grid=(nk,),
                in_specs=[
                    pl.BlockSpec((1, tk), lambda k: (0, k)),             # x
                    pl.BlockSpec((tk, HIDDEN), lambda k: (k, 0)),        # w1
                    pl.BlockSpec((1, HIDDEN), lambda k: (0, 0)),         # b1
                    pl.BlockSpec((HIDDEN, d_out_pad), lambda k: (0, 0)), # w2
                    pl.BlockSpec((1, d_out_pad), lambda k: (0, 0)),      # b2
                ],
                out_specs=pl.BlockSpec((1, d_out_pad), lambda k: (0, 0)),
                scratch_shapes=[pltpu.VMEM((1, HIDDEN), jnp.float32)],
            ),
            compiler_params=pltpu.CompilerParams(
                dimension_semantics=("arbitrary",),   # K is a reduction axis
                vmem_limit_bytes=VMEM_LIMIT,
            ),
            cost_estimate=cost,
        )(x_row, w1, b1, w2, b2)

    return out[:, :d_out]


def reference_forward(x, w1, b1, w2, b2):
    x_flat = x.reshape(1, -1).astype(jnp.float32)
    h = jnp.maximum(x_flat @ w1 + b1[None, :], 0.0)
    return h @ w2 + b2[None, :]


# ----------------------------------------------------------------------------
# Demo / self-test
# ----------------------------------------------------------------------------
if __name__ == "__main__":
    key = jax.random.PRNGKey(0)
    k_x, k_w1, k_b1, k_w2, k_b2 = jax.random.split(key, 5)

    # Input flattens to input_dim = 2*4*32 = 256; output_dim = 8.
    input_dim = 2 * 4 * 32
    output_dim = 8

    x = jax.random.normal(k_x, (2, 4, 32), dtype=jnp.float32)
    # PyTorch stores Linear weight as (out, in); generate directly in the
    # transposed (in, out) layout used by the kernel.
    w1 = jax.random.normal(k_w1, (input_dim, HIDDEN), dtype=jnp.float32) * 0.05
    b1 = jax.random.normal(k_b1, (HIDDEN,), dtype=jnp.float32) * 0.05
    w2 = jax.random.normal(k_w2, (HIDDEN, output_dim), dtype=jnp.float32) * 0.05
    b2 = jax.random.normal(k_b2, (output_dim,), dtype=jnp.float32) * 0.05

    y_ref = reference_forward(x, w1, b1, w2, b2)

    # --- Fast (nk == 1) path, the shape the module is actually used at. ---
    params = prepare_head2_params(w1, b1, w2, b2)
    jax.block_until_ready(params["w1"])
    y = head2_forward(x, params)
    jax.block_until_ready(y)
    assert y.shape == (1, output_dim)
    # w1/x are bf16 (accumulation f32) -> loosened tolerance.
    assert jnp.allclose(y, y_ref, atol=3e-2, rtol=3e-2), "fast-path mismatch"

    # --- Reduction-grid path, exercised with a small forced K tile. ---
    params_small_tk = prepare_head2_params(w1, b1, w2, b2, max_tk=128)
    jax.block_until_ready(params_small_tk["w1"])
    y2 = head2_forward(x, params_small_tk)
    jax.block_until_ready(y2)
    assert y2.shape == (1, output_dim)
    assert jnp.allclose(y2, y_ref, atol=3e-2, rtol=3e-2), "reduce-path mismatch"

    print("KERNEL_OK")
</pallas_src>

<mosaic_0001>
module attributes {stable_mosaic.version = 11 : i64} {
  func.func @head2_kernel_single(%arg0: memref<1x256xbf16, #tpu.memory_space<vmem>>, %arg1: memref<256x128xbf16, #tpu.memory_space<vmem>>, %arg2: memref<1x128xf32, #tpu.memory_space<vmem>>, %arg3: memref<128x128xf32, #tpu.memory_space<vmem>>, %arg4: memref<1x128xf32, #tpu.memory_space<vmem>>, %arg5: memref<1x128xf32, #tpu.memory_space<vmem>>) attributes {dimension_semantics = [], scalar_prefetch = 0 : i64, scratch_operands = 0 : i64, tpu.core_type = #tpu.core_type<tc>} {
    %c0 = arith.constant 0 : index
    %c0_0 = arith.constant 0 : index
    %0 = vector.load %arg0[%c0, %c0_0] : memref<1x256xbf16, #tpu.memory_space<vmem>>, vector<1x256xbf16>
    %c0_1 = arith.constant 0 : index
    %c0_2 = arith.constant 0 : index
    %1 = vector.load %arg1[%c0_1, %c0_2] : memref<256x128xbf16, #tpu.memory_space<vmem>>, vector<256x128xbf16>
    %cst = arith.constant dense<0.000000e+00> : vector<1x128xf32>
    %2 = tpu.matmul %0, %1, %cst {dimension_numbers = #tpu.dot_dimension_numbers<[1], [0], [0], [1], [0, 0, 1, 1], [], []>} : vector<1x256xbf16>, vector<256x128xbf16>, vector<1x128xf32> -> vector<1x128xf32>
    %c0_3 = arith.constant 0 : index
    %c0_4 = arith.constant 0 : index
    %3 = vector.load %arg2[%c0_3, %c0_4] : memref<1x128xf32, #tpu.memory_space<vmem>>, vector<1x128xf32>
    %4 = arith.addf %2, %3 : vector<1x128xf32>
    %cst_5 = arith.constant 0.000000e+00 : f32
    %5 = vector.broadcast %cst_5 : f32 to vector<1x128xf32>
    %6 = arith.maximumf %4, %5 : vector<1x128xf32>
    %c0_6 = arith.constant 0 : index
    %c0_7 = arith.constant 0 : index
    %7 = vector.load %arg3[%c0_6, %c0_7] : memref<128x128xf32, #tpu.memory_space<vmem>>, vector<128x128xf32>
    %cst_8 = arith.constant dense<0.000000e+00> : vector<1x128xf32>
    %8 = tpu.matmul %6, %7, %cst_8 {dimension_numbers = #tpu.dot_dimension_numbers<[1], [0], [0], [1], [0, 0, 1, 1], [], []>} : vector<1x128xf32>, vector<128x128xf32>, vector<1x128xf32> -> vector<1x128xf32>
    %c0_9 = arith.constant 0 : index
    %c0_10 = arith.constant 0 : index
    %9 = vector.load %arg4[%c0_9, %c0_10] : memref<1x128xf32, #tpu.memory_space<vmem>>, vector<1x128xf32>
    %10 = arith.addf %8, %9 : vector<1x128xf32>
    %c0_11 = arith.constant 0 : index
    %c0_12 = arith.constant 0 : index
    %11 = vector.load %arg5[%c0_11, %c0_12] : memref<1x128xf32, #tpu.memory_space<vmem>>, vector<1x128xf32>
    tpu.vector_store %arg5[%c0_11, %c0_12], %10 {strides = array<i32>} : memref<1x128xf32, #tpu.memory_space<vmem>>, vector<1x128xf32>,
    return
  }
}

</mosaic_0001>

<bundles_post_ra>
// kernel: tpu_custom_call.1
= control target key start
LH: loop header
LB: loop body
LE: loop exit
PB: predicated region body
PF: predicated region fallthrough
CT: control target
= control target key end

     0   :  { %10 = vsyncpa [#allocation3], 0  ;;  %s641_s0 = inlined_call_operand.hbm [shape: bf16[1,256], index: 0, kind: input, shape index: {}]   ;;  %s642_s1 = inlined_call_operand.hbm [shape: bf16[256,128], index: 1, kind: input, shape index: {}]   ;;  %s643_s2 = inlined_call_operand.vmem [shape: f32[1,128], index: 2, kind: input, shape index: {}]   ;;  %s644_s3 = inlined_call_operand.hbm [shape: f32[128,128], index: 3, kind: input, shape index: {}]   ;;  %s645_s4 = inlined_call_operand.vmem [shape: f32[1,128], index: 4, kind: input, shape index: {}]   ;;  %s646_s5 = inlined_call_operand.hbm [shape: f32[1,128], index: 5, kind: output, shape index: {}]  }
   0x1   :  { %11 = vsyncpa [#allocation6], 0 }
   0x2   :  { %12 = vsyncpa [#allocation4], 0  ;;  %s565_s18 = smov [#allocation5]  }
   0x3   :  { %s28_s19 = sshll.u32 %s565_s18, 4  ;;  %s29_s19 = int_to_ptr.vmem [resolvable:$true] %s28_s19 }
   0x4   :  { %s487_s20 = scalar_lea.vmem %s29_s19, 2048  ;;  %p492_p1 = scmp.lt.s32.totalorder %s29_s19, %s29_s19 }
   0x5   :  { %p488_p0 = scmp.ne.s32.totalorder %s29_s19, %s487_s20  ;;  %p493_p2 = scmp.lt.s32.totalorder %s487_s20, %s487_s20 }
   0x7   :  { %p494_p3 = por %p493_p2, %p492_p1 }
   0x9   :  { %p495_p4 = pnand %p494_p3, %p488_p0 }
   0xb   :  { %498 = shalt.err (!%p495_p4)
}
   0xc   :  { %s566_s21 = smov 64   ;;  %s567_s22 = smov 4  }
   0xd   :  { %34 = dma.hbm_to_vmem [thread:$0]  %s642_s1, 2048, %s29_s19, [#allocation6], %s566_s21, %s566_s21, %s567_s22  }
   0xe   :  { %s568_s25 = smov [#allocation2]   ;;  %s569_s27 = smov [#allocation7]  }
   0xf   :  { %s19_s26 = sshll.u32 %s568_s25, 4  ;;  %s42_s28 = sshll.u32 %s569_s27, 4  ;;  %s20_s26 = int_to_ptr.vmem [resolvable:$true] %s19_s26  ;;  %s43_s28 = int_to_ptr.vmem [resolvable:$true] %s42_s28 }
  0x10   :  { %s507_s29 = scalar_lea.vmem %s20_s26, 32  ;;  %p512_p6 = scmp.lt.s32.totalorder %s20_s26, %s20_s26 }
  0x11   :  { %p508_p5 = scmp.ne.s32.totalorder %s20_s26, %s507_s29  ;;  %p513_p7 = scmp.lt.s32.totalorder %s507_s29, %s507_s29 }
  0x13   :  { %p514_p8 = por %p513_p7, %p512_p6 }
  0x15   :  { %p515_p9 = pnand %p514_p8, %p508_p5 }
  0x17   :  { %518 = shalt.err (!%p515_p9)
}
  0x18   :  { %22 = dma.hbm_to_vmem [thread:$0]  %s641_s0, 32, %s20_s26, [#allocation3]  }
  0x19   :  { %s527_s7 = scalar_lea.vmem %s43_s28, 2048  ;;  %p532_p11 = scmp.lt.s32.totalorder %s43_s28, %s43_s28 }
  0x1a   :  { %p528_p10 = scmp.ne.s32.totalorder %s43_s28, %s527_s7  ;;  %p533_p12 = scmp.lt.s32.totalorder %s527_s7, %s527_s7 }
  0x1c   :  { %p534_p13 = por %p533_p12, %p532_p11 }
  0x1e   :  { %p535_p0 = pnand %p534_p13, %p528_p10 }
  0x20   :  { %538 = shalt.err (!%p535_p0)
}
  0x21   :  { %s570_s1 = smov 128   ;;  %s571_s8 = smov 8  }
  0x22   :  { %48 = dma.hbm_to_vmem [thread:$0]  %s644_s3, 2048, %s43_s28, [#allocation6], %s570_s1, %s570_s1, %s571_s8  }
  0x23   :  { %559 = dma.done.wait [#allocation3], 32  }
  0x24   :  { %560 = vsyncadd [#allocation3], 4294967264 }
  0x25   :  { %561 = dma.done.wait [#allocation6], 4096  }
  0x26   :  { %562 = vsyncadd [#allocation6], 4294963200  ;;  %v572_v0 = vmov 0.0   ;;  %v463_v1 = vld [vmem:[#allocation5 + $0x78] sm:$0xff]   ;;  %v465_v3 = vld [vmem:[#allocation5 + $0x70] sm:$0xff]   ;;  %v107_v9 = vlaneseq  ;;  %vm574_vm0 = vmmov 0  }
  0x27   :  { %417 = vmatprep.subr.mxu1 %v572_v0  ;;  %v464_v2 = vld [vmem:[#allocation5 + $0x38] sm:$0xff]   ;;  %378 = vmatprep.subr.bf16.mxu0 %v463_v1  ;;  %v466_v4 = vld [vmem:[#allocation5 + $0x30] sm:$0xff]   ;;  %v467_v5 = vld [vmem:[#allocation5 + $0x68] sm:$0xff]   ;;  %v573_v7 = vmov 1966171168   ;;  %s575_s13 = smov [#allocation8]  }
  0x28   :  { %379 = vmatpush3.bf16.msra.mxu0 %v464_v2  ;;  %v468_v6 = vld [vmem:[#allocation5 + $0x28] sm:$0xff]   ;;  %v105_v8 = vunpack.c.l.s4 %v573_v7  ;;  %v469_v10 = vld [vmem:[#allocation5 + $0x60] sm:$0xff]   ;;  %v108_v13 = vshrl.u32 %v107_v9, 7  ;;  %v471_v14 = vld [vmem:[#allocation5 + $0x58] sm:$0xff]   ;;  %449 = vmatprep.mubr.msk.f32.mxu1 %vm574_vm0, %v572_v0  ;;  %s351_s14 = sshll.u32 %s575_s13, 4  ;;  %s352_s14 = int_to_ptr.vmem [resolvable:$true] %s351_s14 }
  0x29   :  { %380 = vmatprep.subr.bf16.mxu0 %v465_v3  ;;  %v470_v11 = vld [vmem:[#allocation5 + $0x20] sm:$0xff]   ;;  %v472_v15 = vld [vmem:[#allocation5 + $0x18] sm:$0xff]   ;;  %v473_v16 = vld [vmem:[#allocation5 + $0x50] sm:$0xff]   ;;  %s539_s15 = scalar_lea.vmem %s352_s14, 16  ;;  %p544_p2 = scmp.lt.s32.totalorder %s352_s14, %s352_s14 }
  0x2a   :  { %v106_v12 = vunpack.c.0.s8 %v105_v8  ;;  %v361_v18 = vld.sshfl [vmem:[#allocation2] sm:$0x11 pattern:$0x75316420]  ;;  %v271_v20 = vld [vmem:[#allocation7 + $0x70] sm:$0xff]  ;;  %v270_v22 = vld [vmem:[#allocation7 + $0x68] sm:$0xff]  ;;  %p540_p1 = scmp.ne.s32.totalorder %s352_s14, %s539_s15 }
  0x2b   :  { %v272_v19 = vld [vmem:[#allocation7 + $0x78] sm:$0xff]  ;;  %v103_v21 = vcombine.high %v361_v18, %v361_v18  ;;  %v474_v23 = vld [vmem:[#allocation5 + $0x10] sm:$0xff]   ;;  %v475_v25 = vld [vmem:[#allocation5 + $0x48] sm:$0xff]  }
  0x2c   :  { %381 = vmatpush3.bf16.msra.mxu0 %v466_v4  ;;  %v109_v17 = vsub.s32 %v106_v12, %v108_v13  ;;  %418 = vmatpush3.msra.mxu1 %v272_v19  ;;  %v269_v26 = vld [vmem:[#allocation7 + $0x60] sm:$0xff]  ;;  %v268_v27 = vld [vmem:[#allocation7 + $0x58] sm:$0xff]  ;;  %v476_v28 = vld [vmem:[#allocation5 + $0x8] sm:$0xff]  }
  0x2d   :  { %382 = vmatprep.subr.bf16.mxu0 %v467_v5  ;;  %419 = vmatprep.subr.mxu1 %v572_v0  ;;  %v477_v29 = vld [vmem:[#allocation5 + $0x40] sm:$0xff]   ;;  %v267_v30 = vld [vmem:[#allocation7 + $0x50] sm:$0xff]  ;;  %v266_v31 = vld [vmem:[#allocation7 + $0x48] sm:$0xff] }
  0x2e   :  { %v117_v24 = vrot.slane %v103_v21, %v109_v17  ;;  %420 = vmatpush3.msra.mxu1 %v271_v20  ;;  %v478_v32 = vld [vmem:[#allocation5] sm:$0xff]   ;;  %v110_v34 = vrot.slane %v361_v18, %v109_v17  ;;  %v264_v35 = vld [vmem:[#allocation7 + $0x38] sm:$0xff]  ;;  %v263_v36 = vld [vmem:[#allocation7 + $0x30] sm:$0xff] }
  0x2f   :  { %421 = vmatprep.subr.mxu1 %v572_v0  ;;  %v265_v33 = vld [vmem:[#allocation7 + $0x40] sm:$0xff]  ;;  %v262_v37 = vld [vmem:[#allocation7 + $0x28] sm:$0xff]  ;;  %v260_v39 = vld [vmem:[#allocation7 + $0x18] sm:$0xff] }
  0x30   :  { %383 = vmatpush3.bf16.msra.mxu0 %v468_v6  ;;  %248 = vmatprep.mubr.bf16.mxu0 %v117_v24  ;;  %v261_v38 = vld [vmem:[#allocation7 + $0x20] sm:$0xff]  ;;  %v259_v40 = vld [vmem:[#allocation7 + $0x10] sm:$0xff]  ;;  %v258_v41 = vld [vmem:[#allocation7 + $0x8] sm:$0xff] }
  0x31   :  { %384 = vmatprep.subr.bf16.mxu0 %v469_v10  ;;  %422 = vmatpush3.msra.mxu1 %v270_v22  ;;  %v257_v42 = vld [vmem:[#allocation7] sm:$0xff]  ;;  %v94_v44 = vld [vmem:[%s643_s2] sm:$0x1]  ;;  %s543_s2 = scalar_lea.vmem %s352_s14, 32 }
  0x32   :  { %423 = vmatprep.subr.mxu1 %v572_v0  ;;  %v273_v51 = vld [vmem:[%s645_s4] sm:$0x1]  ;;  %p545_p3 = scmp.lt.s32.totalorder %s543_s2, %s539_s15 }
  0x33   :  { %424 = vmatpush3.msra.mxu1 %v269_v26 }
  0x34   :  { %385 = vmatpush3.bf16.msra.mxu0 %v470_v11  ;;  %425 = vmatprep.subr.mxu1 %v572_v0  ;;  %p546_p4 = por %p545_p3, %p544_p2 }
  0x35   :  { %386 = vmatprep.subr.bf16.mxu0 %v471_v14  ;;  %426 = vmatpush3.msra.mxu1 %v268_v27 }
  0x36   :  { %427 = vmatprep.subr.mxu1 %v572_v0  ;;  %p547_p5 = pnand %p546_p4, %p540_p1 }
  0x37   :  { %428 = vmatpush3.msra.mxu1 %v267_v30 }
  0x38   :  { %387 = vmatpush3.bf16.msra.mxu0 %v472_v15  ;;  %429 = vmatprep.subr.mxu1 %v572_v0 }
  0x39   :  { %388 = vmatprep.subr.bf16.mxu0 %v473_v16  ;;  %430 = vmatpush3.msra.mxu1 %v266_v31 }
  0x3a   :  { %431 = vmatprep.subr.mxu1 %v572_v0 }
  0x3b   :  { %432 = vmatpush3.msra.mxu1 %v265_v33 }
  0x3c   :  { %389 = vmatpush3.bf16.msra.mxu0 %v474_v23  ;;  %433 = vmatprep.subr.mxu1 %v572_v0 }
  0x3d   :  { %390 = vmatprep.subr.bf16.mxu0 %v475_v25  ;;  %434 = vmatpush3.msra.mxu1 %v264_v35 }
  0x3e   :  { %435 = vmatprep.subr.mxu1 %v572_v0 }
  0x3f   :  { %436 = vmatpush3.msra.mxu1 %v263_v36 }
  0x40   :  { %391 = vmatpush3.bf16.msra.mxu0 %v476_v28  ;;  %437 = vmatprep.subr.mxu1 %v572_v0 }
  0x41   :  { %392 = vmatprep.subr.bf16.mxu0 %v477_v29  ;;  %438 = vmatpush3.msra.mxu1 %v262_v37 }
  0x42   :  { %439 = vmatprep.subr.mxu1 %v572_v0 }
  0x43   :  { %440 = vmatpush3.msra.mxu1 %v261_v38 }
  0x44   :  { %393 = vmatpush3.bf16.msra.mxu0 %v478_v32  ;;  %441 = vmatprep.subr.mxu1 %v572_v0 }
  0x45   :  { %442 = vmatpush3.msra.mxu1 %v260_v39 }
  0x46   :  { %443 = vmatprep.subr.mxu1 %v572_v0 }
  0x47   :  { %249 = vmatmul.mubr.bf16.vlgmr.msra.gmra.mxu0 %v110_v34  ;;  %444 = vmatpush3.msra.mxu1 %v259_v40 }
  0x48   :  { %445 = vmatprep.subr.mxu1 %v572_v0 }
  0x49   :  { %446 = vmatpush3.msra.mxu1 %v258_v41 }
  0x4a   :  { %447 = vmatprep.subr.mxu1 %v572_v0 }
  0x4b   :  { %448 = vmatpush3.msra.mxu1 %v257_v42 }
 0x107   :  { %v394_v43 = vpop.f32.mrf.mxu0 }
 0x109   :  { %v395_v45 = vpop.f32.mrf.mxu0 }
 0x10a   :  { %v396_v46 = vadd.f32 %v395_v45, %v394_v43 }
 0x10b   :  { %v397_v47 = vpop.f32.mrf.mxu0 }
 0x10c   :  { %v251_v48 = vadd.f32 %v396_v46, %v94_v44 }
 0x10d   :  { %v398_v49 = vpop.f32.mrf.mxu0 }
 0x10e   :  { %v256_v50 = vmax.f32 %v251_v48, 0.0 }
 0x110   :  { %450 = vmatmul.mubr.f32.vlgmr.msra.gmra.mxu1 %v256_v50 }
 0x1d0   :  { %v340_v52 = vpop.f32.mrf.mxu1 }
 0x1d1   :  { %v341_v53 = vadd.f32 %v340_v52, %v273_v51 }
 0x1d2   :  { %v451_v54 = vpop.f32.mrf.mxu1 }
 0x1d3   :  { %344 = vst [vmem:[#allocation8] sm:$0x1] %v341_v53 }
 0x1d4   :  { %550 = shalt.err (!%p547_p5)
}
 0x1d5   :  { %354 = dma.vmem_to_hbm [thread:$0]  %s352_s14, 16, %s646_s5, [#allocation4]  }
 0x1d6   :  { %563 = dma.done.wait [#allocation4], 16  }
 0x1d7   :  { %564 = vsyncadd [#allocation4], 4294967280 }
 0x1d8   :  { %358 = vsyncpa [#allocation3], 1 }
 0x1d9   :  { %359 = vsyncpa [#allocation6], 1 }
 0x1da   :  { %360 = vsyncpa [#allocation4], 1 }

</bundles_post_ra>
